<compile_context>
chip_gen: v7x
topology: tpu7x:2x2x1
jax: 0.10.0
libtpu: 0.0.40
codegen_flags: <defaults>
</compile_context>

<pallas_src>
import functools

import jax
import jax.numpy as jnp
from jax.experimental import pallas as pl
from jax.experimental.pallas import tpu as pltpu


# ----------------------------- Pallas kernels -----------------------------

def _conv_bnstats_kernel(x_ref, w_ref, m_ref, y_ref, sum_ref, sq_ref, *,
                         kSize, dilation, Wpad, Lout):
    """Direct conv for one (image, row-block) + fused BN partial statistics.

    x_ref : (1, Cin, Lin)    bf16  padded input rows, flattened with pitch Wpad
    w_ref : (kk, Cout, Cin)  bf16  VMEM-resident weights
    m_ref : (1, 1, Lout)     f32   validity mask for the BN statistics
    y_ref : (1, Cout, Lout)  bf16  conv output (flattened, pitch Wpad)
    sum_ref, sq_ref : (1, 1, Cout, 1) f32 per-block BN partial sums
    """
    # TODO(synk): for small Cin/Cout these per-position (Cout x Cin)@(Cin x L)
    # pushes underfill the 256x256 MXU on v6e/v7x; batching the kSize kernel
    # columns into a single (Cout x kS*Cin) contraction would raise utilization.
    acc = None
    for ki in range(kSize):
        for kj in range(kSize):
            off = (ki * Wpad + kj) * dilation
            xs = x_ref[0, :, off:off + Lout]                 # (Cin, Lout) bf16
            wk = w_ref[ki * kSize + kj]                      # (Cout, Cin) bf16
            p = jnp.dot(wk, xs, preferred_element_type=jnp.float32)
            acc = p if acc is None else acc + p              # f32 accumulation

    y_ref[0] = acc.astype(y_ref.dtype)                       # bf16 store to HBM

    # BN statistics while the f32 tile is still live: mask kills the garbage
    # wrap-around columns, padded rows and (for stride>1) off-grid positions.
    m = m_ref[0]                                             # (1, Lout) in {0,1}
    ym = acc * m
    sum_ref[0, 0] = jnp.sum(ym, axis=1, keepdims=True)       # (Cout, 1)
    sq_ref[0, 0] = jnp.sum(ym * ym, axis=1, keepdims=True)


def _bn_relu_kernel(y_ref, scale_ref, shift_ref, o_ref, *, w_keep):
    """Folded BN affine + ReLU; drops the wrap columns and writes NCHW."""
    y = y_ref[0].astype(jnp.float32)                         # (Cout, th, Wpad)
    z = jnp.maximum(y * scale_ref[...] + shift_ref[...], 0.0)
    o_ref[0] = z[:, :, :w_keep].astype(o_ref.dtype)          # (Cout, th, w_keep)


# ----------------------------- pallas_call wrappers -----------------------------

def _conv_pass(x_flat, w_flat, masks, *, N, num_hb, Cout, kSize, dilation,
               Wpad, Lout):
    NB, Cin, Lin = x_flat.shape
    kernel = functools.partial(_conv_bnstats_kernel, kSize=kSize,
                               dilation=dilation, Wpad=Wpad, Lout=Lout)
    return pl.pallas_call(
        kernel,
        out_shape=(
            jax.ShapeDtypeStruct((NB, Cout, Lout), jnp.bfloat16),
            jax.ShapeDtypeStruct((N, num_hb, Cout, 1), jnp.float32),
            jax.ShapeDtypeStruct((N, num_hb, Cout, 1), jnp.float32),
        ),
        grid_spec=pltpu.PrefetchScalarGridSpec(
            num_scalar_prefetch=0,
            grid=(N, num_hb),
            in_specs=[
                pl.BlockSpec((1, Cin, Lin), lambda n, hb: (n * num_hb + hb, 0, 0)),
                pl.BlockSpec(w_flat.shape, lambda n, hb: (0, 0, 0)),   # resident
                pl.BlockSpec((1, 1, Lout), lambda n, hb: (hb, 0, 0)),
            ],
            out_specs=(
                pl.BlockSpec((1, Cout, Lout), lambda n, hb: (n * num_hb + hb, 0, 0)),
                pl.BlockSpec((1, 1, Cout, 1), lambda n, hb: (n, hb, 0, 0)),
                pl.BlockSpec((1, 1, Cout, 1), lambda n, hb: (n, hb, 0, 0)),
            ),
        ),
        compiler_params=pltpu.CompilerParams(
            dimension_semantics=("parallel", "parallel")),
    )(x_flat, w_flat, masks)


def _bn_relu_pass(y5, scale, shift, *, N, num_hb, Hp, w_keep):
    NB, Cout, th, Wpad = y5.shape
    kernel = functools.partial(_bn_relu_kernel, w_keep=w_keep)
    return pl.pallas_call(
        kernel,
        out_shape=jax.ShapeDtypeStruct((N, Cout, Hp, w_keep), jnp.float32),
        grid_spec=pltpu.PrefetchScalarGridSpec(
            num_scalar_prefetch=0,
            grid=(N, num_hb),
            in_specs=[
                pl.BlockSpec((1, Cout, th, Wpad),
                             lambda n, hb: (n * num_hb + hb, 0, 0, 0)),
                pl.BlockSpec((Cout, 1, 1), lambda n, hb: (0, 0, 0)),   # resident
                pl.BlockSpec((Cout, 1, 1), lambda n, hb: (0, 0, 0)),   # resident
            ],
            out_specs=pl.BlockSpec((1, Cout, th, w_keep),
                                   lambda n, hb: (n, 0, hb, 0)),
        ),
        compiler_params=pltpu.CompilerParams(
            dimension_semantics=("parallel", "parallel")),
    )(y5, scale, shift)


# ----------------------------- CBR forward -----------------------------

def _pick_block_rows(H1, Cin, Cout, Wpad, budget_bytes=4 * 1024 * 1024):
    """Output rows per block: whole image if it fits a modest VMEM budget,
    else the largest multiple of 8 under budget (preferring divisors of H1)."""
    per_row = Wpad * (4 * Cin + 20 * Cout)       # rough per-row VMEM footprint
    th = int(budget_bytes // max(per_row, 1))
    if th >= H1:
        return H1
    th = max(8, (th // 8) * 8)
    for t in range(th, 7, -8):                   # prefer a divisor: no tail slice
        if H1 % t == 0:
            return t
    return th


def cbr_forward(x_nchw, weight_oihw, gamma, beta, *,
                kSize, stride=1, dilation=1, eps=1e-3, block_rows=None):
    N, Cin, H, W = map(int, x_nchw.shape)
    Cout = int(weight_oihw.shape[0])
    kS, s, d = int(kSize), int(stride), int(dilation)
    p = ((kS - 1) // 2) * d

    H_out = (H + 2 * p - d * (kS - 1) - 1) // s + 1
    W_out = (W + 2 * p - d * (kS - 1) - 1) // s + 1
    # Stride-1 conv grid; stride>1 is realised by subsampling that grid.
    # TODO(synk): a strided gather in the kernel would avoid the s^2 extra conv
    # work for stride>1 layers (CBR defaults to stride=1).
    H1 = H + 2 * p - d * (kS - 1)
    W1 = W + 2 * p - d * (kS - 1)
    Wpad = W + 2 * p
    h_valid = (H_out - 1) * s + 1
    w_valid = (W_out - 1) * s + 1

    # Row-block size (stride-1 output rows per grid step).
    th = block_rows if block_rows is not None else _pick_block_rows(H1, Cin, Cout, Wpad)
    th = max(1, min(int(th), H1))
    num_hb = -(-H1 // th)
    if num_hb > 1 and th % 8 != 0:               # pass-2 output block constraint
        th = max(8, (th // 8) * 8)
        num_hb = -(-H1 // th)
    Hp = num_hb * th
    th_in = th + (kS - 1) * d + 1                # +1 row covers the flat overrun
    Lin = th_in * Wpad
    Lout = th * Wpad
    H_ext = (num_hb - 1) * th + th_in

    # ---- glue: pad + (only if tiled) overlapping row-block gather; no im2col ----
    x_b = x_nchw.astype(jnp.bfloat16)
    x_pad = jnp.pad(x_b, ((0, 0), (0, 0), (p, H_ext - H - p), (p, p)))
    if num_hb == 1:
        x_flat = x_pad.reshape(N, Cin, Lin)
    else:
        row_idx = (jnp.arange(num_hb) * th)[:, None] + jnp.arange(th_in)[None, :]
        x_tiles = x_pad[:, :, row_idx, :]                   # (N, Cin, hb, th_in, Wpad)
        x_flat = jnp.moveaxis(x_tiles, 2, 1).reshape(N * num_hb, Cin, Lin)

    # Weights: (kk, Cout, Cin), bf16, kept resident in VMEM by the kernel.
    w_flat = jnp.transpose(weight_oihw, (2, 3, 0, 1)).reshape(kS * kS, Cout, Cin)
    w_flat = w_flat.astype(jnp.bfloat16)

    # BN-statistics validity mask per row-block: true output-grid positions only
    # (kills wrap-around columns, padded rows, and off-stride positions).
    hb_rows = (jnp.arange(num_hb) * th)[:, None] + jnp.arange(th)[None, :]
    row_ok = (hb_rows < h_valid) & (hb_rows % s == 0)        # (num_hb, th)
    cols = jnp.arange(Wpad)
    col_ok = (cols < w_valid) & (cols % s == 0)              # (Wpad,)
    masks = (row_ok[:, :, None] & col_ok[None, None, :]).astype(jnp.float32)
    masks = masks.reshape(num_hb, 1, Lout)

    # ---- pass 1: direct conv + fused BN partial statistics ----
    yt, psum, psq = _conv_pass(x_flat, w_flat, masks, N=N, num_hb=num_hb,
                               Cout=Cout, kSize=kS, dilation=d, Wpad=Wpad,
                               Lout=Lout)

    # ---- fold train-mode BN (biased variance over N*H_out*W_out) into affine ----
    count = float(N * H_out * W_out)
    tot = jnp.sum(psum, axis=(0, 1))                         # (Cout, 1)
    tot_sq = jnp.sum(psq, axis=(0, 1))
    mean = tot / count
    # TODO(synk): one-pass E[x^2]-E[x]^2 variance (clamped); PyTorch uses a
    # two-pass variance, which is more robust when |mean| >> std.
    var = jnp.maximum(tot_sq / count - mean * mean, 0.0)
    gamma_c = gamma.reshape(Cout, 1).astype(jnp.float32)
    beta_c = beta.reshape(Cout, 1).astype(jnp.float32)
    scale_c = gamma_c * jax.lax.rsqrt(var + eps)
    shift_c = beta_c - mean * scale_c
    scale = scale_c.reshape(Cout, 1, 1)
    shift = shift_c.reshape(Cout, 1, 1)
    # TODO(synk): running_mean/running_var momentum update (training-time side
    # effect of nn.BatchNorm2d) is not reproduced here.

    # ---- pass 2: BN affine + ReLU, written directly as NCHW ----
    y5 = yt.reshape(N * num_hb, Cout, th, Wpad)              # free minor-dim split
    out = _bn_relu_pass(y5, scale, shift, N=N, num_hb=num_hb, Hp=Hp, w_keep=W1)

    # Strip row padding / apply stride subsampling (a no-op for stride 1 when
    # the tiling divides H_out).
    out = out[:, :, 0:h_valid:s, 0:w_valid:s]
    return out


# ----------------------------- reference & demo -----------------------------

def _reference(x, weight, gamma, beta, kSize, stride, dilation, eps=1e-3):
    """Pure-JAX train-mode CBR reference (conv at the kernel's bf16-in/f32-acc
    precision)."""
    p = ((kSize - 1) // 2) * dilation
    y = jax.lax.conv_general_dilated(
        x.astype(jnp.bfloat16), weight.astype(jnp.bfloat16),
        window_strides=(stride, stride),
        padding=[(p, p), (p, p)], rhs_dilation=(dilation, dilation),
        dimension_numbers=("NCHW", "OIHW", "NCHW"),
        preferred_element_type=jnp.float32)
    mean = y.mean(axis=(0, 2, 3), keepdims=True)
    var = y.var(axis=(0, 2, 3), keepdims=True)
    g = gamma[None, :, None, None]
    b = beta[None, :, None, None]
    return jnp.maximum((y - mean) * jax.lax.rsqrt(var + eps) * g + b, 0.0)


if __name__ == "__main__":
    key = jax.random.PRNGKey(0)
    k1, k2, k3, k4 = jax.random.split(key, 4)

    # Primary config (small shapes consistent with the module).
    N, Cin, H, W = 2, 4, 16, 16
    Cout, kSize, stride, dilation = 8, 3, 1, 1

    x = jax.random.normal(k1, (N, Cin, H, W), dtype=jnp.float32)
    weight = 0.1 * jax.random.normal(k2, (Cout, Cin, kSize, kSize), dtype=jnp.float32)
    gamma = 1.0 + 0.1 * jax.random.normal(k3, (Cout,), dtype=jnp.float32)
    beta = 0.1 * jax.random.normal(k4, (Cout,), dtype=jnp.float32)

    out = cbr_forward(x, weight, gamma, beta,
                      kSize=kSize, stride=stride, dilation=dilation)
    out = jax.block_until_ready(out)
    ref = _reference(x, weight, gamma, beta, kSize, stride, dilation)
    assert out.shape == (N, Cout, H, W), out.shape
    max_err = float(jnp.abs(out - ref).max())
    assert jnp.allclose(out, ref, atol=1e-2, rtol=1e-2), max_err

    # Secondary config: exercises the row-tiled (halo) path with a partial last
    # row block (H_out not a multiple of the block height) and odd channel counts.
    N2, Cin2, H2, W2, Cout2 = 2, 5, 20, 24, 16
    x2 = jax.random.normal(k2, (N2, Cin2, H2, W2), dtype=jnp.float32)
    w2 = 0.1 * jax.random.normal(k3, (Cout2, Cin2, kSize, kSize), dtype=jnp.float32)
    g2 = 1.0 + 0.1 * jax.random.normal(k4, (Cout2,), dtype=jnp.float32)
    b2 = 0.1 * jax.random.normal(k1, (Cout2,), dtype=jnp.float32)

    out2 = cbr_forward(x2, w2, g2, b2, kSize=kSize, stride=1, dilation=1,
                       block_rows=8)
    out2 = jax.block_until_ready(out2)
    ref2 = _reference(x2, w2, g2, b2, kSize, 1, 1)
    assert out2.shape == (N2, Cout2, H2, W2), out2.shape
    max_err2 = float(jnp.abs(out2 - ref2).max())
    assert jnp.allclose(out2, ref2, atol=1e-2, rtol=1e-2), max_err2

    print("KERNEL_OK")
</pallas_src>

<mosaic_0001>
module attributes {stable_mosaic.version = 11 : i64} {
  func.func @_conv_bnstats_kernel(%arg0: i32, %arg1: i32, %arg2: memref<1x4x342xbf16, #tpu.memory_space<vmem>>, %arg3: memref<9x8x4xbf16, #tpu.memory_space<vmem>>, %arg4: memref<1x1x288xf32, #tpu.memory_space<vmem>>, %arg5: memref<1x8x288xbf16, #tpu.memory_space<vmem>>, %arg6: memref<1x1x8x1xf32, #tpu.memory_space<vmem>>, %arg7: memref<1x1x8x1xf32, #tpu.memory_space<vmem>>) attributes {dimension_semantics = [#tpu.dimension_semantics<parallel>, #tpu.dimension_semantics<parallel>], iteration_bounds = array<i64: 2, 1>, scalar_prefetch = 0 : i64, scratch_operands = 0 : i64, tpu.core_type = #tpu.core_type<tc>, window_params = [{transform_indices = @transform_0, window_bounds = array<i64: 1, 4, 342>}, {pipeline_mode = #tpu.pipeline_mode<synchronous>, transform_indices = @transform_1, window_bounds = array<i64: 9, 8, 4>}, {transform_indices = @transform_2, window_bounds = array<i64: 1, 1, 288>}, {transform_indices = @transform_3, window_bounds = array<i64: 1, 8, 288>}, {transform_indices = @transform_4, window_bounds = array<i64: 1, 1, 8, 1>}, {transform_indices = @transform_5, window_bounds = array<i64: 1, 1, 8, 1>}]} {
    %c0 = arith.constant 0 : index
    %c0_0 = arith.constant 0 : index
    %c0_1 = arith.constant 0 : index
    %0 = vector.load %arg2[%c0, %c0_0, %c0_1] : memref<1x4x342xbf16, #tpu.memory_space<vmem>>, vector<1x4x288xbf16>
    %1 = vector.shape_cast %0 : vector<1x4x288xbf16> to vector<4x288xbf16>
    %c0_2 = arith.constant 0 : index
    %c0_3 = arith.constant 0 : index
    %c0_4 = arith.constant 0 : index
    %2 = vector.load %arg3[%c0_2, %c0_3, %c0_4] : memref<9x8x4xbf16, #tpu.memory_space<vmem>>, vector<1x8x4xbf16>
    %3 = vector.shape_cast %2 : vector<1x8x4xbf16> to vector<8x4xbf16>
    %cst = arith.constant dense<0.000000e+00> : vector<8x288xf32>
    %4 = tpu.matmul %3, %1, %cst {dimension_numbers = #tpu.dot_dimension_numbers<[1], [0], [0], [1], [0, 0, 1, 1], [], []>} : vector<8x4xbf16>, vector<4x288xbf16>, vector<8x288xf32> -> vector<8x288xf32>
    %c0_5 = arith.constant 0 : index
    %c0_6 = arith.constant 0 : index
    %c1 = arith.constant 1 : index
    %5 = vector.load %arg2[%c0_5, %c0_6, %c1] : memref<1x4x342xbf16, #tpu.memory_space<vmem>>, vector<1x4x288xbf16>
    %6 = vector.shape_cast %5 : vector<1x4x288xbf16> to vector<4x288xbf16>
    %c1_7 = arith.constant 1 : index
    %c0_8 = arith.constant 0 : index
    %c0_9 = arith.constant 0 : index
    %7 = vector.load %arg3[%c1_7, %c0_8, %c0_9] : memref<9x8x4xbf16, #tpu.memory_space<vmem>>, vector<1x8x4xbf16>
    %8 = vector.shape_cast %7 : vector<1x8x4xbf16> to vector<8x4xbf16>
    %cst_10 = arith.constant dense<0.000000e+00> : vector<8x288xf32>
    %9 = tpu.matmul %8, %6, %cst_10 {dimension_numbers = #tpu.dot_dimension_numbers<[1], [0], [0], [1], [0, 0, 1, 1], [], []>} : vector<8x4xbf16>, vector<4x288xbf16>, vector<8x288xf32> -> vector<8x288xf32>
    %10 = arith.addf %4, %9 : vector<8x288xf32>
    %c0_11 = arith.constant 0 : index
    %c0_12 = arith.constant 0 : index
    %c2 = arith.constant 2 : index
    %11 = vector.load %arg2[%c0_11, %c0_12, %c2] : memref<1x4x342xbf16, #tpu.memory_space<vmem>>, vector<1x4x288xbf16>
    %12 = vector.shape_cast %11 : vector<1x4x288xbf16> to vector<4x288xbf16>
    %c2_13 = arith.constant 2 : index
    %c0_14 = arith.constant 0 : index
    %c0_15 = arith.constant 0 : index
    %13 = vector.load %arg3[%c2_13, %c0_14, %c0_15] : memref<9x8x4xbf16, #tpu.memory_space<vmem>>, vector<1x8x4xbf16>
    %14 = vector.shape_cast %13 : vector<1x8x4xbf16> to vector<8x4xbf16>
    %cst_16 = arith.constant dense<0.000000e+00> : vector<8x288xf32>
    %15 = tpu.matmul %14, %12, %cst_16 {dimension_numbers = #tpu.dot_dimension_numbers<[1], [0], [0], [1], [0, 0, 1, 1], [], []>} : vector<8x4xbf16>, vector<4x288xbf16>, vector<8x288xf32> -> vector<8x288xf32>
    %16 = arith.addf %10, %15 : vector<8x288xf32>
    %c0_17 = arith.constant 0 : index
    %c0_18 = arith.constant 0 : index
    %c18 = arith.constant 18 : index
    %17 = vector.load %arg2[%c0_17, %c0_18, %c18] : memref<1x4x342xbf16, #tpu.memory_space<vmem>>, vector<1x4x288xbf16>
    %18 = vector.shape_cast %17 : vector<1x4x288xbf16> to vector<4x288xbf16>
    %c3 = arith.constant 3 : index
    %c0_19 = arith.constant 0 : index
    %c0_20 = arith.constant 0 : index
    %19 = vector.load %arg3[%c3, %c0_19, %c0_20] : memref<9x8x4xbf16, #tpu.memory_space<vmem>>, vector<1x8x4xbf16>
    %20 = vector.shape_cast %19 : vector<1x8x4xbf16> to vector<8x4xbf16>
    %cst_21 = arith.constant dense<0.000000e+00> : vector<8x288xf32>
    %21 = tpu.matmul %20, %18, %cst_21 {dimension_numbers = #tpu.dot_dimension_numbers<[1], [0], [0], [1], [0, 0, 1, 1], [], []>} : vector<8x4xbf16>, vector<4x288xbf16>, vector<8x288xf32> -> vector<8x288xf32>
    %22 = arith.addf %16, %21 : vector<8x288xf32>
    %c0_22 = arith.constant 0 : index
    %c0_23 = arith.constant 0 : index
    %c19 = arith.constant 19 : index
    %23 = vector.load %arg2[%c0_22, %c0_23, %c19] : memref<1x4x342xbf16, #tpu.memory_space<vmem>>, vector<1x4x288xbf16>
    %24 = vector.shape_cast %23 : vector<1x4x288xbf16> to vector<4x288xbf16>
    %c4 = arith.constant 4 : index
    %c0_24 = arith.constant 0 : index
    %c0_25 = arith.constant 0 : index
    %25 = vector.load %arg3[%c4, %c0_24, %c0_25] : memref<9x8x4xbf16, #tpu.memory_space<vmem>>, vector<1x8x4xbf16>
    %26 = vector.shape_cast %25 : vector<1x8x4xbf16> to vector<8x4xbf16>
    %cst_26 = arith.constant dense<0.000000e+00> : vector<8x288xf32>
    %27 = tpu.matmul %26, %24, %cst_26 {dimension_numbers = #tpu.dot_dimension_numbers<[1], [0], [0], [1], [0, 0, 1, 1], [], []>} : vector<8x4xbf16>, vector<4x288xbf16>, vector<8x288xf32> -> vector<8x288xf32>
    %28 = arith.addf %22, %27 : vector<8x288xf32>
    %c0_27 = arith.constant 0 : index
    %c0_28 = arith.constant 0 : index
    %c20 = arith.constant 20 : index
    %29 = vector.load %arg2[%c0_27, %c0_28, %c20] : memref<1x4x342xbf16, #tpu.memory_space<vmem>>, vector<1x4x288xbf16>
    %30 = vector.shape_cast %29 : vector<1x4x288xbf16> to vector<4x288xbf16>
    %c5 = arith.constant 5 : index
    %c0_29 = arith.constant 0 : index
    %c0_30 = arith.constant 0 : index
    %31 = vector.load %arg3[%c5, %c0_29, %c0_30] : memref<9x8x4xbf16, #tpu.memory_space<vmem>>, vector<1x8x4xbf16>
    %32 = vector.shape_cast %31 : vector<1x8x4xbf16> to vector<8x4xbf16>
    %cst_31 = arith.constant dense<0.000000e+00> : vector<8x288xf32>
    %33 = tpu.matmul %32, %30, %cst_31 {dimension_numbers = #tpu.dot_dimension_numbers<[1], [0], [0], [1], [0, 0, 1, 1], [], []>} : vector<8x4xbf16>, vector<4x288xbf16>, vector<8x288xf32> -> vector<8x288xf32>
    %34 = arith.addf %28, %33 : vector<8x288xf32>
    %c0_32 = arith.constant 0 : index
    %c0_33 = arith.constant 0 : index
    %c36 = arith.constant 36 : index
    %35 = vector.load %arg2[%c0_32, %c0_33, %c36] : memref<1x4x342xbf16, #tpu.memory_space<vmem>>, vector<1x4x288xbf16>
    %36 = vector.shape_cast %35 : vector<1x4x288xbf16> to vector<4x288xbf16>
    %c6 = arith.constant 6 : index
    %c0_34 = arith.constant 0 : index
    %c0_35 = arith.constant 0 : index
    %37 = vector.load %arg3[%c6, %c0_34, %c0_35] : memref<9x8x4xbf16, #tpu.memory_space<vmem>>, vector<1x8x4xbf16>
    %38 = vector.shape_cast %37 : vector<1x8x4xbf16> to vector<8x4xbf16>
    %cst_36 = arith.constant dense<0.000000e+00> : vector<8x288xf32>
    %39 = tpu.matmul %38, %36, %cst_36 {dimension_numbers = #tpu.dot_dimension_numbers<[1], [0], [0], [1], [0, 0, 1, 1], [], []>} : vector<8x4xbf16>, vector<4x288xbf16>, vector<8x288xf32> -> vector<8x288xf32>
    %40 = arith.addf %34, %39 : vector<8x288xf32>
    %c0_37 = arith.constant 0 : index
    %c0_38 = arith.constant 0 : index
    %c37 = arith.constant 37 : index
    %41 = vector.load %arg2[%c0_37, %c0_38, %c37] : memref<1x4x342xbf16, #tpu.memory_space<vmem>>, vector<1x4x288xbf16>
    %42 = vector.shape_cast %41 : vector<1x4x288xbf16> to vector<4x288xbf16>
    %c7 = arith.constant 7 : index
    %c0_39 = arith.constant 0 : index
    %c0_40 = arith.constant 0 : index
    %43 = vector.load %arg3[%c7, %c0_39, %c0_40] : memref<9x8x4xbf16, #tpu.memory_space<vmem>>, vector<1x8x4xbf16>
    %44 = vector.shape_cast %43 : vector<1x8x4xbf16> to vector<8x4xbf16>
    %cst_41 = arith.constant dense<0.000000e+00> : vector<8x288xf32>
    %45 = tpu.matmul %44, %42, %cst_41 {dimension_numbers = #tpu.dot_dimension_numbers<[1], [0], [0], [1], [0, 0, 1, 1], [], []>} : vector<8x4xbf16>, vector<4x288xbf16>, vector<8x288xf32> -> vector<8x288xf32>
    %46 = arith.addf %40, %45 : vector<8x288xf32>
    %c0_42 = arith.constant 0 : index
    %c0_43 = arith.constant 0 : index
    %c38 = arith.constant 38 : index
    %47 = vector.load %arg2[%c0_42, %c0_43, %c38] : memref<1x4x342xbf16, #tpu.memory_space<vmem>>, vector<1x4x288xbf16>
    %48 = vector.shape_cast %47 : vector<1x4x288xbf16> to vector<4x288xbf16>
    %c8 = arith.constant 8 : index
    %c0_44 = arith.constant 0 : index
    %c0_45 = arith.constant 0 : index
    %49 = vector.load %arg3[%c8, %c0_44, %c0_45] : memref<9x8x4xbf16, #tpu.memory_space<vmem>>, vector<1x8x4xbf16>
    %50 = vector.shape_cast %49 : vector<1x8x4xbf16> to vector<8x4xbf16>
    %cst_46 = arith.constant dense<0.000000e+00> : vector<8x288xf32>
    %51 = tpu.matmul %50, %48, %cst_46 {dimension_numbers = #tpu.dot_dimension_numbers<[1], [0], [0], [1], [0, 0, 1, 1], [], []>} : vector<8x4xbf16>, vector<4x288xbf16>, vector<8x288xf32> -> vector<8x288xf32>
    %52 = arith.addf %46, %51 : vector<8x288xf32>
    %53 = arith.truncf %52 : vector<8x288xf32> to vector<8x288xbf16>
    %c0_47 = arith.constant 0 : index
    %c0_48 = arith.constant 0 : index
    %c0_49 = arith.constant 0 : index
    %54 = vector.load %arg5[%c0_47, %c0_48, %c0_49] : memref<1x8x288xbf16, #tpu.memory_space<vmem>>, vector<1x8x288xbf16>
    %55 = vector.shape_cast %54 : vector<1x8x288xbf16> to vector<8x288xbf16>
    %56 = vector.shape_cast %53 : vector<8x288xbf16> to vector<1x8x288xbf16>
    tpu.vector_store %arg5[%c0_47, %c0_48, %c0_49], %56 {strides = array<i32>} : memref<1x8x288xbf16, #tpu.memory_space<vmem>>, vector<1x8x288xbf16>,
    %c0_50 = arith.constant 0 : index
    %c0_51 = arith.constant 0 : index
    %c0_52 = arith.constant 0 : index
    %57 = vector.load %arg4[%c0_50, %c0_51, %c0_52] : memref<1x1x288xf32, #tpu.memory_space<vmem>>, vector<1x1x288xf32>
    %58 = vector.shape_cast %57 : vector<1x1x288xf32> to vector<1x288xf32>
    %59 = vector.broadcast %58 : vector<1x288xf32> to vector<8x288xf32>
    %60 = arith.mulf %52, %59 : vector<8x288xf32>
    %cst_53 = arith.constant dense<0.000000e+00> : vector<8xf32>
    %61 = vector.multi_reduction <add>, %60, %cst_53 [1] : vector<8x288xf32> to vector<8xf32>
    %62 = vector.shape_cast %61 : vector<8xf32> to vector<8x1xf32>
    %c0_54 = arith.constant 0 : index
    %c0_55 = arith.constant 0 : index
    %c0_56 = arith.constant 0 : index
    %c0_57 = arith.constant 0 : index
    %63 = vector.load %arg6[%c0_54, %c0_55, %c0_56, %c0_57] : memref<1x1x8x1xf32, #tpu.memory_space<vmem>>, vector<1x1x8x1xf32>
    %64 = vector.shape_cast %63 : vector<1x1x8x1xf32> to vector<8x1xf32>
    %65 = vector.shape_cast %62 : vector<8x1xf32> to vector<1x1x8x1xf32>
    tpu.vector_store %arg6[%c0_54, %c0_55, %c0_56, %c0_57], %65 {strides = array<i32>} : memref<1x1x8x1xf32, #tpu.memory_space<vmem>>, vector<1x1x8x1xf32>,
    %66 = arith.mulf %60, %60 : vector<8x288xf32>
    %cst_58 = arith.constant dense<0.000000e+00> : vector<8xf32>
    %67 = vector.multi_reduction <add>, %66, %cst_58 [1] : vector<8x288xf32> to vector<8xf32>
    %68 = vector.shape_cast %67 : vector<8xf32> to vector<8x1xf32>
    %c0_59 = arith.constant 0 : index
    %c0_60 = arith.constant 0 : index
    %c0_61 = arith.constant 0 : index
    %c0_62 = arith.constant 0 : index
    %69 = vector.load %arg7[%c0_59, %c0_60, %c0_61, %c0_62] : memref<1x1x8x1xf32, #tpu.memory_space<vmem>>, vector<1x1x8x1xf32>
    %70 = vector.shape_cast %69 : vector<1x1x8x1xf32> to vector<8x1xf32>
    %71 = vector.shape_cast %68 : vector<8x1xf32> to vector<1x1x8x1xf32>
    tpu.vector_store %arg7[%c0_59, %c0_60, %c0_61, %c0_62], %71 {strides = array<i32>} : memref<1x1x8x1xf32, #tpu.memory_space<vmem>>, vector<1x1x8x1xf32>,
    return
  }
  func.func @transform_0(%arg0: i32, %arg1: i32) -> (i32, i32, i32) {
    %c1_i32 = arith.constant 1 : i32
    %0 = arith.muli %arg0, %c1_i32 : i32
    %1 = arith.addi %0, %arg1 : i32
    %c0_i32 = arith.constant 0 : i32
    %c0_i32_0 = arith.constant 0 : i32
    %c0_i32_1 = arith.constant 0 : i32
    return %1, %c0_i32, %c0_i32_0 : i32, i32, i32
  }
  func.func @transform_1(%arg0: i32, %arg1: i32) -> (i32, i32, i32) {
    %c0_i32 = arith.constant 0 : i32
    %c0_i32_0 = arith.constant 0 : i32
    %c0_i32_1 = arith.constant 0 : i32
    %c0_i32_2 = arith.constant 0 : i32
    return %c0_i32, %c0_i32_0, %c0_i32_1 : i32, i32, i32
  }
  func.func @transform_2(%arg0: i32, %arg1: i32) -> (i32, i32, i32) {
    %c0_i32 = arith.constant 0 : i32
    %c0_i32_0 = arith.constant 0 : i32
    %c0_i32_1 = arith.constant 0 : i32
    return %arg1, %c0_i32, %c0_i32_0 : i32, i32, i32
  }
  func.func @transform_3(%arg0: i32, %arg1: i32) -> (i32, i32, i32) {
    %c1_i32 = arith.constant 1 : i32
    %0 = arith.muli %arg0, %c1_i32 : i32
    %1 = arith.addi %0, %arg1 : i32
    %c0_i32 = arith.constant 0 : i32
    %c0_i32_0 = arith.constant 0 : i32
    %c0_i32_1 = arith.constant 0 : i32
    return %1, %c0_i32, %c0_i32_0 : i32, i32, i32
  }
  func.func @transform_4(%arg0: i32, %arg1: i32) -> (i32, i32, i32, i32) {
    %c0_i32 = arith.constant 0 : i32
    %c0_i32_0 = arith.constant 0 : i32
    %c0_i32_1 = arith.constant 0 : i32
    return %arg0, %arg1, %c0_i32, %c0_i32_0 : i32, i32, i32, i32
  }
  func.func @transform_5(%arg0: i32, %arg1: i32) -> (i32, i32, i32, i32) {
    %c0_i32 = arith.constant 0 : i32
    %c0_i32_0 = arith.constant 0 : i32
    %c0_i32_1 = arith.constant 0 : i32
    return %arg0, %arg1, %c0_i32, %c0_i32_0 : i32, i32, i32, i32
  }
}

</mosaic_0001>

<bundles_post_ra>
// kernel: tpu_custom_call.1
= control target key start
LH: loop header
LB: loop body
LE: loop exit
PB: predicated region body
PF: predicated region fallthrough
CT: control target
= control target key end

     0   :  { %11 = vsyncpa [#allocation3], 0  ;;  %s2294_s0 = inlined_call_operand.vmem [shape: bf16[2,4,342], index: 0, kind: input, shape index: {}]   ;;  %s2295_s1 = inlined_call_operand.vmem [shape: bf16[9,8,4], index: 1, kind: input, shape index: {}]   ;;  %s2296_s2 = inlined_call_operand.vmem [shape: f32[1,1,288], index: 2, kind: input, shape index: {}]   ;;  %s2297_s3 = inlined_call_operand.hbm [shape: bf16[2,8,288], index: 3, kind: output, shape index: {0}]   ;;  %s2298_s4 = inlined_call_operand.vmem [shape: f32[2,1,8,1], index: 4, kind: output, shape index: {1}]   ;;  %s2299_s5 = inlined_call_operand.vmem [shape: f32[2,1,8,1], index: 5, kind: output, shape index: {2}]  }
   0x1   :  { %13 = vsyncpa [#allocation3 + $0x1], 0  ;;  %s2015_s18 = smov 0   ;;  %s2017_s19 = smov 0  }
   0x2   :  { %s2019_s20 = smov 0   ;;  %s2021_s21 = smov 0  }
   0x3   :  { %s2023_s22 = smov 0   ;;  %s2025_s23 = smov 0  }
   0x4 LB: > { %s1627_s24 = sadd.s32 4294967295, %s1970_s23   ;;  %s1628_s25 = sadd.s32 4294967294, %s1970_s23   ;;  %s1970_s23 = sphi %s2025_s23, %s19_s23   ;;  %s1966_s22 = sphi %s2023_s22, %s2306_s22   ;;  %s1962_s21 = sphi %s2021_s21, %s2305_s21   ;;  %s1958_s20 = sphi %s2019_s20, %s2304_s20   ;;  %s1954_s19 = sphi %s2017_s19, %s2303_s19   ;;  %s1950_s18 = sphi %s2015_s18, %s2302_s18  }
   0x5   : > { %s31_s26 = sadd.s32 1, %s1966_s22  ;;  %s115_s27 = sadd.s32 1, %s1958_s20 }
   0x6   : > { %p33_p0 = scmp.ge.s32.totalorder %s31_s26, 2  ;;  %p125_p1 = scmp.ne.s32.totalorder %s1958_s20, %s1954_s19 }
   0x7   : > { %p126_p2 = scmp.eq.s32.totalorder %s1627_s24, 1  ;;  %p131_p3 = scmp.ne.s32.totalorder %s1954_s19, %s1950_s18 }
   0x8   : > { %s2308_s26 = smov (%p33_p0, %s31_s26), 0  ;;  %p132_p5 = scmp.eq.s32.totalorder %s1628_s25, 1 }
   0x9   : > { %p2055_p4 = por %p126_p2, %p125_p1  ;;  %s112_s29 = ssub.s32 %s1966_s22, %s2308_s26 }
   0xa   : > { %p1632_p6 = scmp.ge.s32.totalorder %s1970_s23, 1  ;;  %p113_p7 = scmp.eq.s32.totalorder %s112_s29, 0 }
   0xb   : > { %p2062_p8 = por %p132_p5, %p131_p3  ;;  %p226_p9 = scmp.lt.s32.totalorder %s1970_s23, 3 }
   0xc   : > { %s2068_s6 = scalar_select %p113_p7, %s1958_s20, %s115_s27  }
   0xd   : > { %p227_p10 = pnand %p1632_p6, %p226_p9 }
   0xe   : > { %p274_p11 = scmp.lt.s32.totalorder (!%p227_p10), %s1962_s21, 1  ;;  %v309_v0 = vlaneseq (!%p227_p10)  ;;  %v1972_v1 = vmov (!%p227_p10), 1983009808   ;;  %v1973_v3 = vmov (!%p227_p10), 0.0   ;;  %vm1974_vm0 = vmmov (!%p227_p10), 0   ;;  %s1976_s12 = smov (!%p227_p10), 127  }
   0xf   : > { %230 = sbr.rel (%p227_p10) target bundleno = 614 (0x266), region = 32  ;;  %v307_v2 = vunpack.c.l.s4 (!%p227_p10), %v1972_v1  ;;  %1696 = vmatprep.subr.bf16.mxu1 (!%p227_p10), %v1973_v3  ;;  %1698 = vmatprep.mubr.msk.bf16.mxu1 (!%p227_p10), %vm1974_vm0, %v1973_v3  ;;  %v1975_v6 = vmov (!%p227_p10), 0   ;;  %s1977_s13 = smov (!%p227_p10), 126   ;;  %vm334_vm1 = vcmask (!%p227_p10), 1041408   ;;  %vm327_vm2 = vcmask (!%p227_p10), 1039360  }
  0x10   : > { %v2075_v4 = vshrl.u32 (!%p227_p10), %v309_v0, 7  ;;  %376 = vmatprep.mubr.bf16.mxu0 (!%p227_p10), %v1975_v6  ;;  %s1978_s14 = smov (!%p227_p10), 110   ;;  %s1979_s15 = smov (!%p227_p10), 109   ;;  %v1636_v52 = vld [vmem:[%s2295_s1 + $0x4] sm:$0xf] (!%p227_p10)  ;;  %vm330_vm3 = vcmask (!%p227_p10), 31744  }
  0x11   : > { %v308_v5 = vunpack.c.0.s8 (!%p227_p10), %v307_v2  ;;  %s1980_s16 = smov (!%p227_p10), 108   ;;  %s1981_s17 = smov (!%p227_p10), 92   ;;  %vm544_vm4 = vcmask (!%p227_p10), 1031168   ;;  %v301_v63 = vld [vmem:[%s2295_s1] sm:$0xf] (!%p227_p10)  ;;  %vm669_vm5 = vcmask (!%p227_p10), 900096  }
  0x12   : > { %s1982_s24 = smov (!%p227_p10), 91   ;;  %s1983_s25 = smov (!%p227_p10), 90   ;;  %vm794_vm6 = vcmask (!%p227_p10), 891904   ;;  %vm919_vm7 = vcmask (!%p227_p10), 883712   ;;  %vm1044_vm8 = vcmask (!%p227_p10), 752640   ;;  %vm1169_vm9 = vcmask (!%p227_p10), 744448  }
  0x13   : > { %v2082_v7 = vsub.s32 (!%p227_p10), %v308_v5, %v2075_v4  ;;  %vm1294_vm10 = vcmask (!%p227_p10), 736256   ;;  %s252_s10 = sand.u32 (!%p227_p10), 1, %s1954_s19   ;;  %vm1407_vm11 = vcmask (!%p227_p10), 257024   ;;  %vm1430_vm12 = vcmask (!%p227_p10), 261120  }
  0x14   : > { %s1447_s27 = scalar_lea.sflag (!%p227_p10), [#allocation3], %s252_s10 }
  0x16   : > { %s2073_s7 = scalar_select %p274_p11, %s1962_s21, 1 }
  0x18   : > { %s1815_s8 = smul.u32 6, %s2073_s7 }
  0x1a   : > { %s2087_s11 = scalar_lea.vmem %s2294_s0, %s1815_s8  ;;  %s1984_s8 = smov [#allocation2]  }
  0x1b   : > { %v300_v8 = vld [vmem:[%s2087_s11] sm:$0x3f]  ;;  %s1896_s9 = sshll.u32 %s1984_s8, 4  ;;  %s1897_s9 = int_to_ptr.vmem [resolvable:$false] %s1896_s9 }
  0x1c   : > { %v2091_v9 = vrot.slane %v300_v8, %v2082_v7  ;;  %v305_v10 = vcombine.high %v300_v8, %v300_v8  ;;  %v518_v11 = vld [vmem:[%s2087_s11] sm:$0x3f] }
  0x1d   : > { %v529_v14 = vrot.slane %v518_v11, %v2082_v7  ;;  %v522_v15 = vcombine.high %v518_v11, %v518_v11  ;;  %v643_v17 = vld [vmem:[%s2087_s11] sm:$0x3f] }
  0x1e   : > { %321 = vrot.lane.b32.xlu0 %v2091_v9, %s1976_s12  ;;  %v2096_v12 = vrot.slane %v305_v10, %v2082_v7  ;;  %v2100_v13 = vcombine.high %v2091_v9, %v2091_v9  ;;  %v654_v19 = vrot.slane %v643_v17, %v2082_v7  ;;  %v647_v20 = vcombine.high %v643_v17, %v643_v17  ;;  %v768_v22 = vld [vmem:[%s2087_s11] sm:$0x3f]  ;;  %v1643_v10 = vld [vmem:[%s2295_s1 + $0x8] sm:$0xf] }
  0x1f   : > { %v537_v16 = vcombine.high %v529_v14, %v529_v14  ;;  %v536_v18 = vrot.slane %v522_v15, %v2082_v7  ;;  %v779_v24 = vrot.slane %v768_v22, %v2082_v7  ;;  %v772_v25 = vcombine.high %v768_v22, %v768_v22  ;;  %v893_v27 = vld [vmem:[%s2087_s11] sm:$0x3f] }
  0x20   : > { %325 = vrot.lane.b32.xlu1 %v2096_v12, %s1976_s12  ;;  %v662_v21 = vcombine.high %v654_v19, %v654_v19  ;;  %v661_v23 = vrot.slane %v647_v20, %v2082_v7  ;;  %v904_v29 = vrot.slane %v893_v27, %v2082_v7  ;;  %v897_v30 = vcombine.high %v893_v27, %v893_v27  ;;  %v1018_v32 = vld [vmem:[%s2087_s11] sm:$0x3f] }
  0x21   : > { %v787_v26 = vcombine.high %v779_v24, %v779_v24  ;;  %v786_v28 = vrot.slane %v772_v25, %v2082_v7  ;;  %v1029_v34 = vrot.slane %v1018_v32, %v2082_v7  ;;  %v1022_v35 = vcombine.high %v1018_v32, %v1018_v32  ;;  %v1143_v37 = vld [vmem:[%s2087_s11] sm:$0x3f] }
  0x22   : > { %323 = vrot.lane.b32.xlu0 %v2100_v13, %s1976_s12  ;;  %v912_v31 = vcombine.high %v904_v29, %v904_v29  ;;  %v911_v33 = vrot.slane %v897_v30, %v2082_v7  ;;  %v1154_v39 = vrot.slane %v1143_v37, %v2082_v7  ;;  %v1147_v40 = vcombine.high %v1143_v37, %v1143_v37  ;;  %v1268_v42 = vld [vmem:[%s2087_s11] sm:$0x3f]  ;;  %s1898_s11 = scalar_lea.vmem %s1897_s9, 384 }
  0x23   : > { %v1037_v36 = vcombine.high %v1029_v34, %v1029_v34  ;;  %v1036_v38 = vrot.slane %v1022_v35, %v2082_v7  ;;  %v1279_v44 = vrot.slane %v1268_v42, %v2082_v7  ;;  %v1272_v45 = vcombine.high %v1268_v42, %v1268_v42  ;;  %v1659_v42 = vld [vmem:[%s2295_s1 + $0x18] sm:$0xf] }
  0x24   : > { %538 = vrot.lane.b32.xlu1 %v529_v14, %s1977_s13  ;;  %v1162_v41 = vcombine.high %v1154_v39, %v1154_v39  ;;  %v1161_v43 = vrot.slane %v1147_v40, %v2082_v7  ;;  %v435_v55 = vsel %vm334_vm1, %v2096_v12, 0  ;;  %v429_v58 = vsel %vm334_vm1, %v2091_v9, 0 }
  0x25   : > { %v1287_v46 = vcombine.high %v1279_v44, %v1279_v44  ;;  %v1286_v47 = vrot.slane %v1272_v45, %v2082_v7 }
  0x26   : > { %540 = vrot.lane.b32.xlu0 %v537_v16, %s1977_s13 }
  0x28   : > { %542 = vrot.lane.b32.xlu1 %v536_v18, %s1977_s13  ;;  %v1647_v18 = vld [vmem:[%s2295_s1 + $0xc] sm:$0xf]  ;;  %s1814_s13 = smul.u32 12, %s252_s10 }
  0x2a   : > { %663 = vrot.lane.b32.xlu0 %v654_v19, %s1978_s14 }
  0x2c   : > { %665 = vrot.lane.b32.xlu1 %v662_v21, %s1978_s14 }
  0x2e   : > { %667 = vrot.lane.b32.xlu0 %v661_v23, %s1978_s14  ;;  %s254_s14 = scalar_lea.vmem [#allocation2], %s1814_s13 }
  0x30   : > { %788 = vrot.lane.b32.xlu1 %v779_v24, %s1979_s15 }
  0x32   : > { %790 = vrot.lane.b32.xlu0 %v787_v26, %s1979_s15  ;;  %v1651_v26 = vld [vmem:[%s2295_s1 + $0x10] sm:$0xf] }
  0x34   : > { %792 = vrot.lane.b32.xlu1 %v786_v28, %s1979_s15  ;;  %s1816_s15 = smul.u32 192, %s1962_s21 }
  0x36   : > { %913 = vrot.lane.b32.xlu0 %v904_v29, %s1980_s16 }
  0x38   : > { %915 = vrot.lane.b32.xlu1 %v912_v31, %s1980_s16 }
  0x3a   : > { %917 = vrot.lane.b32.xlu0 %v911_v33, %s1980_s16  ;;  %s1476_s16 = sshll.u32 %s254_s14, 4  ;;  %s1477_s16 = int_to_ptr.vmem [resolvable:$true] %s1476_s16 }
  0x3b   : > { %s1892_s29 = scalar_lea.vmem %s1477_s16, 192  ;;  %p1899_p1 = scmp.lt.s32.totalorder %s1477_s16, %s1897_s9 }
  0x3c   : > { %1038 = vrot.lane.b32.xlu1 %v1029_v34, %s1981_s17  ;;  %v1655_v34 = vld [vmem:[%s2295_s1 + $0x14] sm:$0xf]  ;;  %p1893_p12 = scmp.ne.s32.totalorder %s1477_s16, %s1892_s29  ;;  %p1900_p2 = scmp.lt.s32.totalorder %s1898_s11, %s1892_s29 }
  0x3e   : > { %1040 = vrot.lane.b32.xlu0 %v1037_v36, %s1981_s17  ;;  %p1894_p13 = pnand %p1893_p12, %p2055_p4  ;;  %p1901_p3 = por %p1900_p2, %p1899_p1 }
  0x40   : > { %1042 = vrot.lane.b32.xlu1 %v1036_v38, %s1981_s17  ;;  %p1895_p0 = pneg %p1894_p13 }
  0x42   : > { %1163 = vrot.lane.b32.xlu0 %v1154_v39, %s1982_s24  ;;  %p1902_p5 = pnand %p1901_p3, %p1895_p0 }
  0x44   : > { %1165 = vrot.lane.b32.xlu1 %v1162_v41, %s1982_s24 }
  0x46   : > { %1167 = vrot.lane.b32.xlu0 %v1161_v43, %s1982_s24 }
  0x48   : > { %1288 = vrot.lane.b32.xlu1 %v1279_v44, %s1983_s25 }
  0x4a   : > { %1290 = vrot.lane.b32.xlu0 %v1287_v46, %s1983_s25 }
  0x4c   : > { %1292 = vrot.lane.b32.xlu1 %v1286_v47, %s1983_s25  ;;  %s2244_s25 = scalar_lea.hbm %s2297_s3, %s1816_s15 }
  0x90   : > { %v322_v48 = vpop.permute.xlu0 %321 }
  0x92   : > { %v326_v49 = vpop.permute.xlu1 %325 }
  0x93   : > { %v342_v50 = vsel %vm334_vm1, %v326_v49, 0 }
  0x94   : > { %v324_v51 = vpop.permute.xlu0 %323  ;;  %1697 = vmatpush3.bf16.msra.mxu1 %v342_v50 }
  0x95   : > { %v329_v53 = vsel %vm327_vm2, %v324_v51, %v326_v49  ;;  %v328_v54 = vsel %vm327_vm2, %v322_v48, %v324_v51  ;;  %1702 = vmatprep.subr.bf16.mxu1 %v1973_v3  ;;  %v1663_v49 = vld [vmem:[%s2295_s1 + $0x1c] sm:$0xf] }
  0x96   : > { %1637 = vmatprep.subr.msk.bf16.mxu0 %vm334_vm1, %v329_v53  ;;  %v336_v56 = vsel %vm334_vm1, %v328_v54, 0  ;;  %v539_v57 = vpop.permute.xlu1 %538  ;;  %v1667_v53 = vld [vmem:[%s2295_s1 + $0x20] sm:$0xf]  ;;  %v1421_v54 = vsub.s32 2, %v2075_v4 }
  0x97   : > { %345 = vmatpush1.bf16.msra.mxu0 %v336_v56  ;;  %1699 = vmatmul.mubr.msk.bf16.vlgmr.msra.gmra.mrb[0].mxu1 %vm330_vm3, %v1636_v52 }
  0x98   : > { %1640 = vmatprep.subr.msk.bf16.mxu0 %vm334_vm1, %v2100_v13  ;;  %1703 = vmatpush3.bf16.msra.mxu1 %v435_v55  ;;  %v541_v59 = vpop.permute.xlu0 %540  ;;  %v1413_v55 = vsub.s32 0, %v2075_v4 }
  0x99   : > { %1704 = vmatprep.mubr.msk.bf16.mxu1 %vm1974_vm0, %v1973_v3  ;;  %1708 = vmatprep.subr.bf16.mxu1 %v1973_v3  ;;  %v545_v0 = vsel %vm544_vm4, %v539_v57, %v541_v59 }
  0x9a   : > { %1638 = vmatmul.mubr.msk.bf16.vlgmr.msra.gmra.mrb[0].mxu0 %vm330_vm3, %v1636_v52  ;;  %v543_v60 = vpop.permute.xlu1 %542  ;;  %v551_v7 = vsel %vm334_vm1, %v545_v0, 0 }
  0x9b   : > { %438 = vmatpush1.bf16.msra.mxu0 %v429_v58  ;;  %v546_v61 = vsel %vm544_vm4, %v541_v59, %v543_v60  ;;  %469 = vmatprep.mubr.bf16.mxu0 %v1975_v6  ;;  %v557_v1 = vsel %vm334_vm1, %v543_v60, 0 }
  0x9c   : > { %1644 = vmatprep.subr.msk.bf16.mxu0 %vm334_vm1, %v546_v61  ;;  %v664_v62 = vpop.permute.xlu0 %663 }
  0x9e   : > { %v666_v2 = vpop.permute.xlu1 %665 }
  0x9f   : > { %v670_v11 = vsel %vm669_vm5, %v664_v62, %v666_v2 }
  0xa0   : > { %v668_v5 = vpop.permute.xlu0 %667  ;;  %v676_v15 = vsel %vm334_vm1, %v670_v11, 0 }
  0xa1   : > { %v671_v8 = vsel %vm669_vm5, %v666_v2, %v668_v5  ;;  %v682_v12 = vsel %vm334_vm1, %v668_v5, 0 }
  0xa2   : > { %v789_v9 = vpop.permute.xlu1 %788 }
  0xa3   : > { %1705 = vmatmul.mubr.msk.bf16.vlgmr.msra.gmra.mrb[0].mxu1 %vm330_vm3, %v301_v63 }
  0xa4   : > { %1709 = vmatpush3.bf16.msra.mxu1 %v557_v1  ;;  %1710 = vmatprep.mubr.msk.bf16.mxu1 %vm1974_vm0, %v1973_v3  ;;  %v791_v13 = vpop.permute.xlu0 %790 }
  0xa5   : > { %1714 = vmatprep.subr.bf16.mxu1 %v1973_v3  ;;  %v795_v19 = vsel %vm794_vm6, %v789_v9, %v791_v13 }
  0xa6   : > { %1641 = vmatmul.mubr.msk.bf16.vlgmr.msra.gmra.mrb[0].mxu0 %vm330_vm3, %v301_v63  ;;  %v793_v14 = vpop.permute.xlu1 %792  ;;  %v801_v23 = vsel %vm334_vm1, %v795_v19, 0 }
  0xa7   : > { %560 = vmatpush1.bf16.msra.mxu0 %v551_v7  ;;  %591 = vmatprep.mubr.bf16.mxu0 %v1975_v6  ;;  %v796_v16 = vsel %vm794_vm6, %v791_v13, %v793_v14  ;;  %v807_v20 = vsel %vm334_vm1, %v793_v14, 0 }
  0xa8   : > { %1648 = vmatprep.subr.msk.bf16.mxu0 %vm334_vm1, %v671_v8  ;;  %v914_v17 = vpop.permute.xlu0 %913 }
  0xaa   : > { %v916_v21 = vpop.permute.xlu1 %915 }
  0xab   : > { %v920_v27 = vsel %vm919_vm7, %v914_v17, %v916_v21 }
  0xac   : > { %v918_v22 = vpop.permute.xlu0 %917  ;;  %v926_v31 = vsel %vm334_vm1, %v920_v27, 0 }
  0xad   : > { %v921_v24 = vsel %vm919_vm7, %v916_v21, %v918_v22  ;;  %v932_v28 = vsel %vm334_vm1, %v918_v22, 0 }
  0xae   : > { %v1039_v25 = vpop.permute.xlu1 %1038 }
  0xaf   : > { %1711 = vmatmul.mubr.msk.bf16.vlgmr.msra.gmra.mrb[0].mxu1 %vm330_vm3, %v1643_v10 }
  0xb0   : > { %1715 = vmatpush3.bf16.msra.mxu1 %v682_v12  ;;  %1716 = vmatprep.mubr.msk.bf16.mxu1 %vm1974_vm0, %v1973_v3  ;;  %v1041_v29 = vpop.permute.xlu0 %1040 }
  0xb1   : > { %1720 = vmatprep.subr.bf16.mxu1 %v1973_v3  ;;  %v1045_v35 = vsel %vm1044_vm8, %v1039_v25, %v1041_v29 }
  0xb2   : > { %1645 = vmatmul.mubr.msk.bf16.vlgmr.msra.gmra.mrb[0].mxu0 %vm330_vm3, %v1643_v10  ;;  %v1043_v30 = vpop.permute.xlu1 %1042  ;;  %v1051_v39 = vsel %vm334_vm1, %v1045_v35, 0 }
  0xb3   : > { %685 = vmatpush1.bf16.msra.mxu0 %v676_v15  ;;  %716 = vmatprep.mubr.bf16.mxu0 %v1975_v6  ;;  %v1046_v32 = vsel %vm1044_vm8, %v1041_v29, %v1043_v30  ;;  %v1057_v36 = vsel %vm334_vm1, %v1043_v30, 0 }
  0xb4   : > { %1652 = vmatprep.subr.msk.bf16.mxu0 %vm334_vm1, %v796_v16  ;;  %v1164_v33 = vpop.permute.xlu0 %1163 }
  0xb6   : > { %v1166_v37 = vpop.permute.xlu1 %1165 }
  0xb7   : > { %v1170_v43 = vsel %vm1169_vm9, %v1164_v33, %v1166_v37 }
  0xb8   : > { %v1168_v38 = vpop.permute.xlu0 %1167  ;;  %v1176_v47 = vsel %vm334_vm1, %v1170_v43, 0 }
  0xb9   : > { %v1171_v40 = vsel %vm1169_vm9, %v1166_v37, %v1168_v38  ;;  %v1182_v44 = vsel %vm334_vm1, %v1168_v38, 0 }
  0xba   : > { %v1289_v41 = vpop.permute.xlu1 %1288 }
  0xbb   : > { %1717 = vmatmul.mubr.msk.bf16.vlgmr.msra.gmra.mrb[0].mxu1 %vm330_vm3, %v1647_v18 }
  0xbc   : > { %1721 = vmatpush3.bf16.msra.mxu1 %v807_v20  ;;  %1722 = vmatprep.mubr.msk.bf16.mxu1 %vm1974_vm0, %v1973_v3  ;;  %v1291_v45 = vpop.permute.xlu0 %1290 }
  0xbd   : > { %1726 = vmatprep.subr.bf16.mxu1 %v1973_v3  ;;  %v1295_v50 = vsel %vm1294_vm10, %v1289_v41, %v1291_v45 }
  0xbe   : > { %1649 = vmatmul.mubr.msk.bf16.vlgmr.msra.gmra.mrb[0].mxu0 %vm330_vm3, %v1647_v18  ;;  %v1293_v46 = vpop.permute.xlu1 %1292  ;;  %v1301_v52 = vsel %vm334_vm1, %v1295_v50, 0 }
  0xbf   : > { %810 = vmatpush1.bf16.msra.mxu0 %v801_v23  ;;  %841 = vmatprep.mubr.bf16.mxu0 %v1975_v6  ;;  %v1296_v48 = vsel %vm1294_vm10, %v1291_v45, %v1293_v46  ;;  %v1307_v51 = vsel %vm334_vm1, %v1293_v46, 0 }
  0xc0   : > { %1656 = vmatprep.subr.msk.bf16.mxu0 %vm334_vm1, %v921_v24 }
  0xc7   : > { %1723 = vmatmul.mubr.msk.bf16.vlgmr.msra.gmra.mrb[0].mxu1 %vm330_vm3, %v1651_v26 }
  0xc8   : > { %1727 = vmatpush3.bf16.msra.mxu1 %v932_v28  ;;  %1728 = vmatprep.mubr.msk.bf16.mxu1 %vm1974_vm0, %v1973_v3 }
  0xc9   : > { %1732 = vmatprep.subr.bf16.mxu1 %v1973_v3 }
  0xca   : > { %1653 = vmatmul.mubr.msk.bf16.vlgmr.msra.gmra.mrb[0].mxu0 %vm330_vm3, %v1651_v26 }
  0xcb   : > { %935 = vmatpush1.bf16.msra.mxu0 %v926_v31  ;;  %966 = vmatprep.mubr.bf16.mxu0 %v1975_v6 }
  0xcc   : > { %1660 = vmatprep.subr.msk.bf16.mxu0 %vm334_vm1, %v1046_v32 }
  0xd3   : > { %1729 = vmatmul.mubr.msk.bf16.vlgmr.msra.gmra.mrb[0].mxu1 %vm330_vm3, %v1655_v34 }
  0xd4   : > { %1733 = vmatpush3.bf16.msra.mxu1 %v1057_v36  ;;  %1734 = vmatprep.mubr.msk.bf16.mxu1 %vm1974_vm0, %v1973_v3 }
  0xd5   : > { %1738 = vmatprep.subr.bf16.mxu1 %v1973_v3 }
  0xd6   : > { %1657 = vmatmul.mubr.msk.bf16.vlgmr.msra.gmra.mrb[0].mxu0 %vm330_vm3, %v1655_v34 }
  0xd7   : > { %1060 = vmatpush1.bf16.msra.mxu0 %v1051_v39  ;;  %1091 = vmatprep.mubr.bf16.mxu0 %v1975_v6 }
  0xd8   : > { %1664 = vmatprep.subr.msk.bf16.mxu0 %vm334_vm1, %v1171_v40 }
  0xdf   : > { %1735 = vmatmul.mubr.msk.bf16.vlgmr.msra.gmra.mrb[0].mxu1 %vm330_vm3, %v1659_v42 }
  0xe0   : > { %1739 = vmatpush3.bf16.msra.mxu1 %v1182_v44  ;;  %1740 = vmatprep.mubr.msk.bf16.mxu1 %vm1974_vm0, %v1973_v3 }
  0xe1   : > { %1744 = vmatprep.subr.bf16.mxu1 %v1973_v3 }
  0xe2   : > { %1661 = vmatmul.mubr.msk.bf16.vlgmr.msra.gmra.mrb[0].mxu0 %vm330_vm3, %v1659_v42 }
  0xe3   : > { %1185 = vmatpush1.bf16.msra.mxu0 %v1176_v47  ;;  %1216 = vmatprep.mubr.bf16.mxu0 %v1975_v6 }
  0xe4   : > { %1668 = vmatprep.subr.msk.bf16.mxu0 %vm334_vm1, %v1296_v48 }
  0xeb   : > { %1741 = vmatmul.mubr.msk.bf16.vlgmr.msra.gmra.mrb[0].mxu1 %vm330_vm3, %v1663_v49 }
  0xec   : > { %1745 = vmatpush3.bf16.msra.mxu1 %v1307_v51  ;;  %1746 = vmatprep.mubr.msk.bf16.mxu1 %vm1974_vm0, %v1973_v3  ;;  %v1409_v3 = vld [vmem:[%s2296_s2] sm:$0x7] }
  0xed   : > { %v1422_v56 = vrot.slane %v1409_v3, %v1421_v54  ;;  %v1414_v58 = vrot.slane %v1409_v3, %v1413_v55 }
  0xee   : > { %1665 = vmatmul.mubr.msk.bf16.vlgmr.msra.gmra.mrb[0].mxu0 %vm330_vm3, %v1663_v49 }
  0xef   : > { %1310 = vmatpush1.bf16.msra.mxu0 %v1301_v52  ;;  %1341 = vmatprep.mubr.bf16.mxu0 %v1975_v6  ;;  %v1417_v6 = vsub.s32 1, %v2075_v4 }
  0xf1   : > { %v1418_v61 = vrot.slane %v1409_v3, %v1417_v6 }
  0xf7   : > { %1747 = vmatmul.mubr.msk.bf16.vlgmr.msra.gmra.mrb[0].mxu1 %vm330_vm3, %v1667_v53 }
  0xfa   : > { %1669 = vmatmul.mubr.msk.bf16.vlgmr.msra.gmra.mrb[0].mxu0 %vm330_vm3, %v1667_v53 }
 0x1ca   : > { %v1384_v57 = vpop.f32.mrb[0].mxu1 }
 0x1cb   : > { %v1677_v59 = vpack.c.bf16 %v1384_v57, %v1384_v57  ;;  %v1748_v60 = vpop.f32.mrb[1].mxu1  ;;  %v1428_v62 = vmul.f32 %v1422_v56, %v1384_v57 }
 0x1cc   : > { %v1387_v63 = vpop.f32.mrb[2].mxu1 }
 0x1cd   : > { %v1343_v0 = vpop.f32.mrb[0].mxu0  ;;  %v1749_v1 = vpop.f32.mrb[3].mxu1  ;;  %1408 = vst.msk [vmem:[%s254_s14 + $0x8] sm:$0xf] %vm1407_vm11, %v1677_v59  ;;  %v1439_v4 = vmul.f32 %v1428_v62, %v1428_v62  ;;  %v1431_v14 = vsel %vm1430_vm12, %v1428_v62, 0.0 }
 0x1ce   : > { %v1426_v2 = vmul.f32 %v1414_v58, %v1343_v0  ;;  %v1345_v5 = vpop.f32.mrb[1].mxu0 }
 0x1cf   : > { %v1676_v7 = vpack.c.bf16 %v1345_v5, %v1343_v0  ;;  %v1427_v8 = vmul.f32 %v1418_v61, %v1345_v5  ;;  %v1347_v9 = vpop.f32.mrb[2].mxu0  ;;  %v1441_v17 = vsel %vm1430_vm12, %v1439_v4, 0.0 }
 0x1d0   : > { %v1437_v10 = vmul.f32 %v1426_v2, %v1426_v2  ;;  %v1348_v11 = vpop.f32.mrb[3].mxu0 }
 0x1d1   : > { %1406 = vst [vmem:[%s254_s14] sm:$0xff] %v1676_v7  ;;  %v1438_v12 = vmul.f32 %v1427_v8, %v1427_v8  ;;  %v1429_v13 = vadd.f32 %v1427_v8, %v1426_v2 }
 0x1d3   : > { %v1432_v15 = vadd.f32 %v1431_v14, %v1429_v13  ;;  %v1440_v16 = vadd.f32 %v1438_v12, %v1437_v10 }
 0x1d5   : > { %1433 = vadd.xlane.f32.xlu0 %v1432_v15  ;;  %v1442_v18 = vadd.f32 %v1441_v17, %v1440_v16 }
 0x1d7   : > { %1443 = vadd.xlane.f32.xlu1 %v1442_v18 }
 0x1d8   : > { %1905 = shalt.err (!%p1902_p5)
}
 0x1d9   : > { %s1906_s21 = scalar_lea.hbm %s2244_s25, 192  ;;  %s1910_s13 = scalar_lea.hbm %s2297_s3, 384 }
 0x1da   : > { %p1907_p6 = scmp.ne.s32.totalorder %s2244_s25, %s1906_s21  ;;  %p1911_p10 = scmp.lt.u32.totalorder %s2244_s25, %s2297_s3 }
 0x1db   : > { %p1912_p11 = scmp.lt.u32.totalorder %s1910_s13, %s1906_s21  ;;  %p1914_p13 = scmp.lt.u32.totalorder %s1906_s21, %s2244_s25 }
 0x1dc   : > { %p1908_p7 = pnand %p1907_p6, %p2055_p4 }
 0x1dd   : > { %p1913_p12 = por %p1912_p11, %p1911_p10 }
 0x1de   : > { %p1909_p9 = pneg %p1908_p7 }
 0x1df   : > { %p1915_p0 = por %p1914_p13, %p1913_p12 }
 0x1e1   : > { %p1916_p1 = pnand %p1915_p0, %p1909_p9 }
 0x1e3   : > { %1919 = shalt.err (!%p1916_p1)
}
 0x1e4   : > { %1817 = dma.vmem_to_hbm [thread:$0]  (%p2055_p4), %s1477_s16, 192, %s2244_s25, %s1447_s27   ;;  %vm1435_vm13 = vcmask 7168  }
 0x1e5   : > { %s1634_s17 = sshll.u32 %s2073_s7, 3 }
 0x1e6   : > { %s291_s8 = scalar_lea.vmem %s2298_s4, %s1634_s17  ;;  %s298_s10 = scalar_lea.vmem %s2299_s5, %s1634_s17 }
 0x262   : > { %v1434_v19 = vpop.xlane.xlu0 %1433 }
 0x263   : > { %1436 = vst.msk [vmem:[%s291_s8] sm:$0xff] %vm1435_vm13, %v1434_v19 }
 0x264   : > { %v1444_v20 = vpop.xlane.xlu1 %1443 }
 0x265   : > { %1445 = vst.msk [vmem:[%s298_s10] sm:$0xff] %vm1435_vm13, %v1444_v20 }
 0x266 PF: > { %p1823_p2 = scmp.ge.s32.totalorder %s1970_s23, 2  ;;  %s1494_s28 = sand.u32 1, %s1950_s18  }
 0x267   : > { %s1495_s7 = scalar_lea.sflag [#allocation3], %s1494_s28 }
 0x268   : > { %p1820_p4 = pnand %p1823_p2, %p2062_p8 }
 0x26a   : > { %1945 = dma.done.wait (!%p1820_p4), %s1495_s7, 192  }
 0x26b   : > { %1947 = vsyncadd (!%p1820_p4), %s1495_s7, 4294967104  ;;  %s19_s23 = sadd.s32 1, %s1970_s23   ;;  %s2302_s18 = smov %s1954_s19 }
 0x26c   : > { %p16_p3 = scmp.ge.s32.totalorder %s19_s23, 4   ;;  %s2303_s19 = smov %s1958_s20 }
 0x26d   : > { %s2304_s20 = smov %s2068_s6  ;;  %s2305_s21 = smov %s1966_s22 }
 0x26e   : > { %s2306_s22 = smov %s2308_s26  ;;  %18 = sbr.rel (!%p16_p3) target bundleno = 4 (0x4), region = 102 }
 0x275   :  { %1520 = vsyncpa [#allocation3], 1 }
 0x276   :  { %1522 = vsyncpa [#allocation3 + $0x1], 1 }

</bundles_post_ra>
